<compile_context>
chip_gen: v7x
topology: tpu7x:2x2x1
jax: 0.10.0
libtpu: 0.0.40
codegen_flags: <defaults>
</compile_context>

<pallas_src>
import jax
import jax.numpy as jnp
import numpy as np
from jax import lax
from jax.experimental import pallas as pl
from jax.experimental.pallas import tpu as pltpu


def _prediction_kernel(emb_ref, w1_ref, b1_ref, w2t_ref, b2_ref, w3t_ref, b3_ref,
                       out_ref, zl_ref, zr_ref):
    # emb_ref : (TB, N, F)  matmul dtype        w1_ref : (F, 2*H1) = [W1a | W1b]
    # b1_ref  : (1, H1) f32                     w2t_ref: (H2, H1)  matmul dtype
    # b2_ref  : (H2, 1) f32                     w3t_ref: (1, H2) f32
    # b3_ref  : (1,) f32 in SMEM
    # out_ref : (1, 1, 1, L) f32 with L = TB*N*TJ
    # zl_ref/zr_ref : (TB, N, H1) f32 VMEM scratch (persist across the j axis)
    TB, N, F = emb_ref.shape
    H1 = b1_ref.shape[-1]
    L = out_ref.shape[-1]
    TJ = L // (TB * N)
    j = pl.program_id(1)

    # Layer 1: one packed MXU matmul per batch-block, computed once (j == 0)
    # and kept resident in VMEM scratch across the pair-tile axis.
    @pl.when(j == 0)
    def _():
        emb = emb_ref[...].reshape(TB * N, F)
        z = jnp.dot(emb, w1_ref[...], preferred_element_type=jnp.float32)
        zl_ref[...] = (z[:, :H1] + b1_ref[...]).reshape(TB, N, H1)  # b1 folded pre-broadcast
        zr_ref[...] = z[:, H1:].reshape(TB, N, H1)

    # Pairwise sum == concat-then-Linear.  Only the current j-tile of the
    # "right" operand is expanded, so intermediates are O(N*TJ), not O(N^2).
    j0 = pl.multiple_of(j * TJ, TJ)
    left = zl_ref[...].reshape(TB, N, 1, H1)
    right = zr_ref[:, pl.ds(j0, TJ), :].reshape(TB, 1, TJ, H1)
    h1 = (left + right).reshape(L, H1)
    h1 = jnp.maximum(h1, 0.01 * h1)                                  # LeakyReLU(0.01)

    # Layers 2-3 transposed: the big pair dimension L lands on the MXU lane
    # axis (H2 = F/2 would underfill the 128/256-lane MXU otherwise).
    h1c = h1.astype(w2t_ref.dtype)
    h2_t = lax.dot_general(w2t_ref[...], h1c, (((1,), (1,)), ((), ())),
                           preferred_element_type=jnp.float32) + b2_ref[...]  # (H2, L)
    h2_t = jnp.maximum(h2_t, 0.01 * h2_t)                            # LeakyReLU(0.01)

    # Final Linear(H2 -> 1) as a (1,H2) x (H2,L) matmul -> lane-dense (1, L).
    h3 = jnp.dot(w3t_ref[...], h2_t,
                 preferred_element_type=jnp.float32) + b3_ref[0]
    out_ref[0, 0] = h3.astype(out_ref.dtype)


def _tpu_vmem_and_cores():
    """Best-effort (VMEM capacity in bytes, TensorCores per chip)."""
    vmem_cap = 64 * 1024 * 1024          # conservative default (v7x per-core)
    n_cores = 1
    try:
        info = pltpu.get_tpu_info()
        cap = getattr(info, "vmem_capacity_bytes", None)
        if cap:
            vmem_cap = int(cap)
        for attr in ("num_cores", "tensorcore_count", "num_tensorcores",
                     "cores_per_chip"):
            v = getattr(info, attr, None)
            if isinstance(v, int) and v > 0:
                n_cores = v
                break
    except Exception:
        pass
    if n_cores == 1:
        try:
            if "v7" in jax.devices()[0].device_kind.lower():
                n_cores = 2
        except Exception:
            pass
    return vmem_cap, n_cores


def prediction_layer(embeddings, w1, b1, w2, b2, w3, b3, *,
                     matmul_dtype=jnp.bfloat16, batch_block=None, pair_block=None):
    """embeddings: (B, N, F) float32 -> (B, N, N) float32."""
    B, N, F = embeddings.shape
    H1 = w1.shape[1]
    H2 = w2.shape[1]
    cdt = jnp.dtype(matmul_dtype)
    cbytes = cdt.itemsize

    # --- parameter packing (host side) -------------------------------------
    # W1 = [W1a; W1b] (2F, H1) packed column-wise into (F, 2*H1) = [W1a | W1b]
    w1p = jnp.concatenate([w1[:F, :], w1[F:, :]], axis=1).astype(cdt)
    b1r = b1.reshape(1, H1).astype(jnp.float32)
    w2t = jnp.transpose(w2).astype(cdt)               # (H2, H1)
    b2r = b2.reshape(H2, 1).astype(jnp.float32)
    w3t = w3.reshape(1, H2).astype(jnp.float32)       # (H2, 1) weight, transposed
    b3r = b3.reshape(1).astype(jnp.float32)           # scalar bias -> SMEM
    emb = embeddings.astype(cdt)                      # bf16 DMA: half the HBM bytes

    # --- tile-size selection from real VMEM capacity ------------------------
    vmem_cap, n_cores = _tpu_vmem_and_cores()
    # weights/biases are grid-invariant; account for their (double-buffered) VMEM
    fixed = 2 * ((F * 2 * H1 + H2 * H1) * cbytes + (H1 + 2 * H2 + 1) * 4) + (1 << 14)
    budget = max(3 * vmem_cap // 8 - fixed, 2 * 1024 * 1024)

    def step_bytes(tb, tj):
        p = tb * N * tj
        return (2 * tb * N * F * cbytes           # emb block, double-buffered
                + 2 * p * 4                       # out block, double-buffered
                + 3 * tb * N * H1 * 4             # zl/zr scratch + layer-1 z
                + p * H1 * (8 + 2 * cbytes)       # h1 (+ bcast temp, cast copy)
                + p * H2 * 8 + p * 8)             # h2 (+ leaky), h3

    div_b = [d for d in range(1, B + 1) if B % d == 0]
    if n_cores > 1:                               # keep >=1 'parallel' step per core
        capped = [d for d in div_b if B // d >= n_cores]
        if capped:
            div_b = capped
    if batch_block is not None:
        assert B % batch_block == 0
        div_b = [batch_block]
    # pair tiles stay sublane-aligned (multiple of 8) unless they cover all of N
    div_n = [d for d in range(N, 0, -1) if N % d == 0 and (d == N or d % 8 == 0)]
    if pair_block is not None:
        assert N % pair_block == 0 and (pair_block == N or pair_block % 8 == 0)
        div_n = [pair_block]

    TB = TJ = None
    for tj in div_n:                              # prefer untiled pairs (TJ = N)
        fit = [tb for tb in div_b if step_bytes(tb, tj) <= budget]
        if fit:
            lane = [tb for tb in fit if (tb * N * tj) % 128 == 0]  # lane-dense stores
            TB, TJ = (max(lane) if lane else max(fit)), tj
            break
    if TB is None:                                # nothing fits the budget: smallest tiles
        TB, TJ = min(div_b), div_n[-1]
    # TODO(synk): for N not a multiple of 8 and very large, add an unaligned
    # (pl.Element-style) pair tiling; today such shapes fall back to TJ = N.

    G, NJ, L = B // TB, N // TJ, TB * N * TJ
    vmem_limit = int(min(max(3 * vmem_cap // 4, 2 * step_bytes(TB, TJ) + fixed),
                         128 * 1024 * 1024))

    out = pl.pallas_call(
        _prediction_kernel,
        out_shape=jax.ShapeDtypeStruct((G, NJ, 1, L), jnp.float32),
        grid_spec=pltpu.PrefetchScalarGridSpec(
            num_scalar_prefetch=0,
            grid=(G, NJ),
            in_specs=[
                pl.BlockSpec((TB, N, F), lambda g, j: (g, 0, 0)),    # embeddings
                # weight/bias blocks are grid-invariant (fetched once by Pallas)
                pl.BlockSpec((F, 2 * H1), lambda g, j: (0, 0)),      # packed W1
                pl.BlockSpec((1, H1), lambda g, j: (0, 0)),          # b1
                pl.BlockSpec((H2, H1), lambda g, j: (0, 0)),         # W2^T
                pl.BlockSpec((H2, 1), lambda g, j: (0, 0)),          # b2
                pl.BlockSpec((1, H2), lambda g, j: (0, 0)),          # W3^T
                pl.BlockSpec(memory_space=pltpu.MemorySpace.SMEM),   # b3 scalar
            ],
            out_specs=pl.BlockSpec((1, 1, 1, L), lambda g, j: (g, j, 0, 0)),
            scratch_shapes=[pltpu.VMEM((TB, N, H1), jnp.float32),    # zl (left + b1)
                            pltpu.VMEM((TB, N, H1), jnp.float32)],   # zr (right)
        ),
        compiler_params=pltpu.CompilerParams(
            dimension_semantics=("parallel", "arbitrary"),
            vmem_limit_bytes=vmem_limit),
    )(emb, w1p, b1r, w2t, b2r, w3t, b3r)

    # (G, NJ, TB, N, TJ) -> (B, N, N)
    out = out.reshape(G, NJ, TB, N, TJ)
    return jnp.transpose(out, (0, 2, 3, 1, 4)).reshape(B, N, N)


def prediction_layer_ref(embeddings, w1, b1, w2, b2, w3, b3):
    """Pure-JAX reference mirroring the PyTorch forward (concat then MLP)."""
    B, N, F = embeddings.shape
    left = jnp.broadcast_to(embeddings[:, :, None, :], (B, N, N, F)).reshape(B, N * N, F)
    right = jnp.broadcast_to(embeddings[:, None, :, :], (B, N, N, F)).reshape(B, N * N, F)
    x = jnp.concatenate([left, right], axis=-1)            # (B, N*N, 2F)
    h = x @ w1 + b1
    h = jnp.where(h > 0, h, 0.01 * h)
    h = h @ w2 + b2
    h = jnp.where(h > 0, h, 0.01 * h)
    h = h @ w3 + b3
    return h.reshape(B, N, N)


if __name__ == "__main__":
    key = jax.random.PRNGKey(0)
    k_emb, k1, k2, k3, kb1, kb2, kb3, k_emb2 = jax.random.split(key, 8)

    B = 2            # batch
    N = 8            # n_nodes
    F = 32           # embedding_dim
    H1 = F           # first hidden = embedding_dim
    H2 = F // 2      # second hidden = embedding_dim / 2

    embeddings = jax.random.normal(k_emb, (B, N, F), dtype=jnp.float32)
    # parameters stored as (in, out); PyTorch's x @ W.T + b == x @ W_jax + b
    w1 = jax.random.normal(k1, (2 * F, H1), dtype=jnp.float32) * 0.1
    b1 = jax.random.normal(kb1, (H1,), dtype=jnp.float32) * 0.1
    w2 = jax.random.normal(k2, (H1, H2), dtype=jnp.float32) * 0.1
    b2 = jax.random.normal(kb2, (H2,), dtype=jnp.float32) * 0.1
    w3 = jax.random.normal(k3, (H2, 1), dtype=jnp.float32) * 0.1
    b3 = jax.random.normal(kb3, (1,), dtype=jnp.float32) * 0.1

    ref = prediction_layer_ref(embeddings, w1, b1, w2, b2, w3, b3)

    # exact-algebra check with f32 MXU operands
    out_f32 = jax.block_until_ready(
        prediction_layer(embeddings, w1, b1, w2, b2, w3, b3,
                         matmul_dtype=jnp.float32))
    np.testing.assert_allclose(np.asarray(out_f32), np.asarray(ref),
                               rtol=1e-5, atol=1e-5)
    assert out_f32.shape == (B, N, N)

    # default fast path: bf16 operands DMA'd from HBM, f32 accumulation
    out_bf16 = jax.block_until_ready(
        prediction_layer(embeddings, w1, b1, w2, b2, w3, b3))
    np.testing.assert_allclose(np.asarray(out_bf16), np.asarray(ref),
                               rtol=5e-2, atol=5e-2)
    assert out_bf16.shape == (B, N, N)

    # explicitly exercise the pair-tiled (second grid axis) path at a larger N
    N2 = 16
    embeddings2 = jax.random.normal(k_emb2, (B, N2, F), dtype=jnp.float32)
    ref2 = prediction_layer_ref(embeddings2, w1, b1, w2, b2, w3, b3)
    out_tiled = jax.block_until_ready(
        prediction_layer(embeddings2, w1, b1, w2, b2, w3, b3,
                         batch_block=1, pair_block=8))
    np.testing.assert_allclose(np.asarray(out_tiled), np.asarray(ref2),
                               rtol=5e-2, atol=5e-2)
    assert out_tiled.shape == (B, N2, N2)

    print("KERNEL_OK")
</pallas_src>

<mosaic_0001>
module attributes {stable_mosaic.version = 11 : i64} {
  func.func @_prediction_kernel(%arg0: i32, %arg1: i32, %arg2: memref<2x8x32xf32, #tpu.memory_space<vmem>>, %arg3: memref<32x64xf32, #tpu.memory_space<vmem>>, %arg4: memref<1x32xf32, #tpu.memory_space<vmem>>, %arg5: memref<16x32xf32, #tpu.memory_space<vmem>>, %arg6: memref<16x1xf32, #tpu.memory_space<vmem>>, %arg7: memref<1x16xf32, #tpu.memory_space<vmem>>, %arg8: memref<1xf32, #tpu.memory_space<smem>>, %arg9: memref<1x1x1x128xf32, #tpu.memory_space<vmem>>, %arg10: memref<2x8x32xf32, #tpu.memory_space<vmem>>, %arg11: memref<2x8x32xf32, #tpu.memory_space<vmem>>) attributes {dimension_semantics = [#tpu.dimension_semantics<parallel>, #tpu.dimension_semantics<arbitrary>], iteration_bounds = array<i64: 1, 1>, scalar_prefetch = 0 : i64, scratch_operands = 2 : i64, tpu.core_type = #tpu.core_type<tc>, window_params = [{transform_indices = @transform_0, window_bounds = array<i64: 2, 8, 32>}, {pipeline_mode = #tpu.pipeline_mode<synchronous>, transform_indices = @transform_1, window_bounds = array<i64: 32, 64>}, {pipeline_mode = #tpu.pipeline_mode<synchronous>, transform_indices = @transform_2, window_bounds = array<i64: 1, 32>}, {pipeline_mode = #tpu.pipeline_mode<synchronous>, transform_indices = @transform_3, window_bounds = array<i64: 16, 32>}, {pipeline_mode = #tpu.pipeline_mode<synchronous>, transform_indices = @transform_4, window_bounds = array<i64: 16, 1>}, {pipeline_mode = #tpu.pipeline_mode<synchronous>, transform_indices = @transform_5, window_bounds = array<i64: 1, 16>}, {transform_indices = @transform_6, window_bounds = array<i64: 1>}, {transform_indices = @transform_7, window_bounds = array<i64: 1, 1, 1, 128>}]} {
    %c0_i32 = arith.constant 0 : i32
    %0 = arith.cmpi eq, %arg1, %c0_i32 : i32
    %1 = arith.extui %0 : i1 to i32
    %c0_i32_0 = arith.constant 0 : i32
    %2 = arith.cmpi ne, %1, %c0_i32_0 : i32
    scf.if %2 {
      %c0_19 = arith.constant 0 : index
      %c0_20 = arith.constant 0 : index
      %c0_21 = arith.constant 0 : index
      %33 = vector.load %arg2[%c0_19, %c0_20, %c0_21] : memref<2x8x32xf32, #tpu.memory_space<vmem>>, vector<2x8x32xf32>
      %34 = vector.shape_cast %33 : vector<2x8x32xf32> to vector<16x32xf32>
      %c0_22 = arith.constant 0 : index
      %c0_23 = arith.constant 0 : index
      %35 = vector.load %arg3[%c0_22, %c0_23] : memref<32x64xf32, #tpu.memory_space<vmem>>, vector<32x64xf32>
      %cst_24 = arith.constant dense<0.000000e+00> : vector<16x64xf32>
      %36 = tpu.matmul %34, %35, %cst_24 {dimension_numbers = #tpu.dot_dimension_numbers<[1], [0], [0], [1], [0, 0, 1, 1], [], []>} : vector<16x32xf32>, vector<32x64xf32>, vector<16x64xf32> -> vector<16x64xf32>
      %37 = vector.extract_strided_slice %36 {offsets = [0, 0], sizes = [16, 32], strides = [1, 1]} : vector<16x64xf32> to vector<16x32xf32>
      %c0_25 = arith.constant 0 : index
      %c0_26 = arith.constant 0 : index
      %38 = vector.load %arg4[%c0_25, %c0_26] : memref<1x32xf32, #tpu.memory_space<vmem>>, vector<1x32xf32>
      %39 = vector.broadcast %38 : vector<1x32xf32> to vector<16x32xf32>
      %40 = arith.addf %37, %39 : vector<16x32xf32>
      %41 = vector.shape_cast %40 : vector<16x32xf32> to vector<2x8x32xf32>
      %c0_27 = arith.constant 0 : index
      %c0_28 = arith.constant 0 : index
      %c0_29 = arith.constant 0 : index
      %42 = vector.load %arg10[%c0_27, %c0_28, %c0_29] : memref<2x8x32xf32, #tpu.memory_space<vmem>>, vector<2x8x32xf32>
      tpu.vector_store %arg10[%c0_27, %c0_28, %c0_29], %41 {strides = array<i32>} : memref<2x8x32xf32, #tpu.memory_space<vmem>>, vector<2x8x32xf32>,
      %43 = vector.extract_strided_slice %36 {offsets = [0, 32], sizes = [16, 32], strides = [1, 1]} : vector<16x64xf32> to vector<16x32xf32>
      %44 = vector.shape_cast %43 : vector<16x32xf32> to vector<2x8x32xf32>
      %c0_30 = arith.constant 0 : index
      %c0_31 = arith.constant 0 : index
      %c0_32 = arith.constant 0 : index
      %45 = vector.load %arg11[%c0_30, %c0_31, %c0_32] : memref<2x8x32xf32, #tpu.memory_space<vmem>>, vector<2x8x32xf32>
      tpu.vector_store %arg11[%c0_30, %c0_31, %c0_32], %44 {strides = array<i32>} : memref<2x8x32xf32, #tpu.memory_space<vmem>>, vector<2x8x32xf32>,
    } else {
    }
    %c8_i32 = arith.constant 8 : i32
    %3 = arith.muli %arg1, %c8_i32 : i32
    %4 = tpu.assume_multiple %3, 8 : i32
    %c0 = arith.constant 0 : index
    %c0_1 = arith.constant 0 : index
    %c0_2 = arith.constant 0 : index
    %5 = vector.load %arg10[%c0, %c0_1, %c0_2] : memref<2x8x32xf32, #tpu.memory_space<vmem>>, vector<2x8x32xf32>
    %6 = vector.shape_cast %5 : vector<2x8x32xf32> to vector<2x8x1x32xf32>
    %c0_3 = arith.constant 0 : index
    %7 = arith.index_cast %4 : i32 to index
    %c0_4 = arith.constant 0 : index
    %8 = vector.load %arg11[%c0_3, %7, %c0_4] : memref<2x8x32xf32, #tpu.memory_space<vmem>>, vector<2x8x32xf32>
    %9 = vector.shape_cast %8 : vector<2x8x32xf32> to vector<2x1x8x32xf32>
    %10 = vector.broadcast %6 : vector<2x8x1x32xf32> to vector<2x8x8x32xf32>
    %11 = vector.broadcast %9 : vector<2x1x8x32xf32> to vector<2x8x8x32xf32>
    %12 = arith.addf %10, %11 : vector<2x8x8x32xf32>
    %13 = vector.shape_cast %12 : vector<2x8x8x32xf32> to vector<128x32xf32>
    %cst = arith.constant 0.00999999977 : f32
    %14 = vector.broadcast %cst : f32 to vector<128x32xf32>
    %15 = arith.mulf %14, %13 : vector<128x32xf32>
    %16 = arith.maximumf %13, %15 : vector<128x32xf32>
    %c0_5 = arith.constant 0 : index
    %c0_6 = arith.constant 0 : index
    %17 = vector.load %arg5[%c0_5, %c0_6] : memref<16x32xf32, #tpu.memory_space<vmem>>, vector<16x32xf32>
    %cst_7 = arith.constant dense<0.000000e+00> : vector<16x128xf32>
    %18 = tpu.matmul %17, %16, %cst_7 {dimension_numbers = #tpu.dot_dimension_numbers<[1], [1], [0], [0], [0, 0, 1, 0], [], []>} : vector<16x32xf32>, vector<128x32xf32>, vector<16x128xf32> -> vector<16x128xf32>
    %c0_8 = arith.constant 0 : index
    %c0_9 = arith.constant 0 : index
    %19 = vector.load %arg6[%c0_8, %c0_9] : memref<16x1xf32, #tpu.memory_space<vmem>>, vector<16x1xf32>
    %20 = vector.broadcast %19 : vector<16x1xf32> to vector<16x128xf32>
    %21 = arith.addf %18, %20 : vector<16x128xf32>
    %cst_10 = arith.constant 0.00999999977 : f32
    %22 = vector.broadcast %cst_10 : f32 to vector<16x128xf32>
    %23 = arith.mulf %22, %21 : vector<16x128xf32>
    %24 = arith.maximumf %21, %23 : vector<16x128xf32>
    %c0_11 = arith.constant 0 : index
    %c0_12 = arith.constant 0 : index
    %25 = vector.load %arg7[%c0_11, %c0_12] : memref<1x16xf32, #tpu.memory_space<vmem>>, vector<1x16xf32>
    %cst_13 = arith.constant dense<0.000000e+00> : vector<1x128xf32>
    %26 = tpu.matmul %25, %24, %cst_13 {dimension_numbers = #tpu.dot_dimension_numbers<[1], [0], [0], [1], [0, 0, 1, 1], [], []>} : vector<1x16xf32>, vector<16x128xf32>, vector<1x128xf32> -> vector<1x128xf32>
    %c0_14 = arith.constant 0 : index
    %27 = memref.load %arg8[%c0_14] : memref<1xf32, #tpu.memory_space<smem>>
    %28 = vector.broadcast %27 : f32 to vector<1x128xf32>
    %29 = arith.addf %26, %28 : vector<1x128xf32>
    %c0_15 = arith.constant 0 : index
    %c0_16 = arith.constant 0 : index
    %c0_17 = arith.constant 0 : index
    %c0_18 = arith.constant 0 : index
    %30 = vector.load %arg9[%c0_15, %c0_16, %c0_17, %c0_18] : memref<1x1x1x128xf32, #tpu.memory_space<vmem>>, vector<1x1x1x128xf32>
    %31 = vector.shape_cast %30 : vector<1x1x1x128xf32> to vector<1x128xf32>
    %32 = vector.shape_cast %29 : vector<1x128xf32> to vector<1x1x1x128xf32>
    tpu.vector_store %arg9[%c0_15, %c0_16, %c0_17, %c0_18], %32 {strides = array<i32>} : memref<1x1x1x128xf32, #tpu.memory_space<vmem>>, vector<1x1x1x128xf32>,
    return
  }
  func.func @transform_0(%arg0: i32, %arg1: i32) -> (i32, i32, i32) {
    %c0_i32 = arith.constant 0 : i32
    %c0_i32_0 = arith.constant 0 : i32
    %c0_i32_1 = arith.constant 0 : i32
    return %arg0, %c0_i32, %c0_i32_0 : i32, i32, i32
  }
  func.func @transform_1(%arg0: i32, %arg1: i32) -> (i32, i32) {
    %c0_i32 = arith.constant 0 : i32
    %c0_i32_0 = arith.constant 0 : i32
    %c0_i32_1 = arith.constant 0 : i32
    return %c0_i32, %c0_i32_0 : i32, i32
  }
  func.func @transform_2(%arg0: i32, %arg1: i32) -> (i32, i32) {
    %c0_i32 = arith.constant 0 : i32
    %c0_i32_0 = arith.constant 0 : i32
    %c0_i32_1 = arith.constant 0 : i32
    return %c0_i32, %c0_i32_0 : i32, i32
  }
  func.func @transform_3(%arg0: i32, %arg1: i32) -> (i32, i32) {
    %c0_i32 = arith.constant 0 : i32
    %c0_i32_0 = arith.constant 0 : i32
    %c0_i32_1 = arith.constant 0 : i32
    return %c0_i32, %c0_i32_0 : i32, i32
  }
  func.func @transform_4(%arg0: i32, %arg1: i32) -> (i32, i32) {
    %c0_i32 = arith.constant 0 : i32
    %c0_i32_0 = arith.constant 0 : i32
    %c0_i32_1 = arith.constant 0 : i32
    return %c0_i32, %c0_i32_0 : i32, i32
  }
  func.func @transform_5(%arg0: i32, %arg1: i32) -> (i32, i32) {
    %c0_i32 = arith.constant 0 : i32
    %c0_i32_0 = arith.constant 0 : i32
    %c0_i32_1 = arith.constant 0 : i32
    return %c0_i32, %c0_i32_0 : i32, i32
  }
  func.func @transform_6(%arg0: i32, %arg1: i32) -> i32 {
    %c0_i32 = arith.constant 0 : i32
    %c0_i32_0 = arith.constant 0 : i32
    return %c0_i32 : i32
  }
  func.func @transform_7(%arg0: i32, %arg1: i32) -> (i32, i32, i32, i32) {
    %c0_i32 = arith.constant 0 : i32
    %c0_i32_0 = arith.constant 0 : i32
    %c0_i32_1 = arith.constant 0 : i32
    return %arg0, %arg1, %c0_i32, %c0_i32_0 : i32, i32, i32, i32
  }
}

</mosaic_0001>

<bundles_post_ra>
// kernel: tpu_custom_call.1
= control target key start
LH: loop header
LB: loop body
LE: loop exit
PB: predicated region body
PF: predicated region fallthrough
CT: control target
= control target key end

     0   :  { %13 = vsyncpa [#allocation6], 0  ;;  %s1080_s0 = inlined_call_operand.vmem [shape: f32[2,8,32], index: 0, kind: input, shape index: {}]   ;;  %s1081_s1 = inlined_call_operand.hbm [shape: f32[32,64], index: 1, kind: input, shape index: {}]   ;;  %s1082_s2 = inlined_call_operand.hbm [shape: f32[1,32], index: 2, kind: input, shape index: {}]   ;;  %s1083_s3 = inlined_call_operand.vmem [shape: f32[16,32], index: 3, kind: input, shape index: {}]   ;;  %s1084_s4 = inlined_call_operand.vmem [shape: f32[16,1], index: 4, kind: input, shape index: {}]   ;;  %s1085_s5 = inlined_call_operand.vmem [shape: f32[1,16], index: 5, kind: input, shape index: {}]   ;;  %s1086_s6 = inlined_call_operand.<no memory space> [shape: f32[1], index: 6, kind: input, shape index: {}]   ;;  %s1087_s7 = inlined_call_operand.hbm [shape: f32[1,1,1,128], index: 7, kind: output, shape index: {}]  }
   0x1   :  { %14 = vsyncpa [#allocation9], 0 }
   0x2   :  { %15 = vsyncpa [#allocation7], 0  ;;  %s891_s24 = smov [#allocation5]   ;;  %s819_s28 = scalar_lea.hbm %s1081_s1, 512 }
   0x3   :  { %s23_s25 = sshll.u32 %s891_s24, 4  ;;  %p820_p0 = scmp.ne.s32.totalorder %s1081_s1, %s819_s28  ;;  %s24_s25 = int_to_ptr.vmem [resolvable:$true] %s23_s25 }
   0x4   :  { %p823_p1 = scmp.lt.u32.totalorder %s819_s28, %s1081_s1 }
   0x6   :  { %p825_p2 = pnand %p823_p1, %p820_p0 }
   0x8   :  { %828 = shalt.err (!%p825_p2)
}
   0x9   :  { %s829_s10 = scalar_lea.vmem %s24_s25, 512  ;;  %p834_p4 = scmp.lt.s32.totalorder %s24_s25, %s24_s25 }
   0xa   :  { %p830_p3 = scmp.ne.s32.totalorder %s24_s25, %s829_s10  ;;  %p835_p5 = scmp.lt.s32.totalorder %s829_s10, %s829_s10 }
   0xc   :  { %p836_p6 = por %p835_p5, %p834_p4 }
   0xe   :  { %p837_p7 = pnand %p836_p6, %p830_p3 }
  0x10   :  { %840 = shalt.err (!%p837_p7)
}
  0x11   :  { %s892_s11 = smov 128   ;;  %s893_s12 = smov 8  }
  0x12   :  { %29 = dma.hbm_to_vmem [thread:$0]  %s1081_s1, 512, %s24_s25, [#allocation6], %s892_s11, %s892_s11, %s893_s12  }
  0x13   :  { %s894_s15 = smov [#allocation8]   ;;  %s841_s19 = scalar_lea.hbm %s1082_s2, 16 }
  0x14   :  { %s36_s16 = sshll.u32 %s894_s15, 4  ;;  %p842_p8 = scmp.ne.s32.totalorder %s1082_s2, %s841_s19  ;;  %s37_s16 = int_to_ptr.vmem [resolvable:$true] %s36_s16 }
  0x15   :  { %p845_p9 = scmp.lt.u32.totalorder %s841_s19, %s1082_s2 }
  0x17   :  { %p847_p10 = pnand %p845_p9, %p842_p8 }
  0x19   :  { %850 = shalt.err (!%p847_p10)
}
  0x1a   :  { %s851_s24 = scalar_lea.vmem %s37_s16, 16  ;;  %s855_s1 = scalar_lea.vmem %s37_s16, 32 }
  0x1b   :  { %p852_p11 = scmp.ne.s32.totalorder %s37_s16, %s851_s24  ;;  %p856_p12 = scmp.lt.s32.totalorder %s37_s16, %s37_s16 }
  0x1c   :  { %p857_p13 = scmp.lt.s32.totalorder %s855_s1, %s851_s24 }
  0x1e   :  { %p858_p0 = por %p857_p13, %p856_p12 }
  0x20   :  { %p859_p1 = pnand %p858_p0, %p852_p11 }
  0x22   :  { %862 = shalt.err (!%p859_p1)
}
  0x23   :  { %39 = dma.hbm_to_vmem [thread:$0]  %s1082_s2, 16, %s37_s16, [#allocation9]  }
  0x24   :  { %885 = dma.done.wait [#allocation6], 512  }
  0x25   :  { %886 = vsyncadd [#allocation6], 4294966784 }
  0x26   :  { %887 = dma.done.wait [#allocation9], 16  }
  0x27   :  { %888 = vsyncadd [#allocation9], 4294967280  ;;  %vm64_vm0 = vcmask 261120   ;;  %v60_v0 = vld [vmem:[#allocation5] sm:$0xff]  ;;  %v61_v1 = vld [vmem:[#allocation5 + $0x8] sm:$0xff]  ;;  %s895_s30 = smov 96   ;;  %v176_v19 = vlaneseq }
  0x28   :  { %v62_v2 = vld [vmem:[#allocation5 + $0x10] sm:$0xff]  ;;  %v745_v3 = vpack.c.bf16 %v61_v1, %v60_v0  ;;  %v63_v4 = vld [vmem:[#allocation5 + $0x18] sm:$0xff]  ;;  %v58_v5 = vld [vmem:[%s1080_s0] sm:$0xff]  ;;  %v896_v15 = vmov 0   ;;  %v897_v17 = vmov 1966171168  }
  0x29   :  { %v749_v6 = vpack.c.bf16 %v63_v4, %v62_v2  ;;  %700 = vmatprep.mubr.msk.f32.mxu0 %vm64_vm0, %v58_v5  ;;  %v59_v7 = vld [vmem:[%s1080_s0 + $0x8] sm:$0xff]  ;;  %v645_v8 = vld [vmem:[#allocation8] ss:$0 sm:$0xff]  ;;  %815 = vset.pattern.permute.xlu1 %v896_v15  ;;  %v174_v18 = vunpack.c.l.s4 %v897_v17  ;;  %v177_v21 = vshrl.u32 %v176_v19, 7  ;;  %vm1006_vm1 = vmpackc.low %vm64_vm0, %vm64_vm0  ;;  %vm899_vm2 = vmmov 0   ;;  %s901_s17 = smov [#allocation10]  }
  0x2a   :  { %746 = vmatprep.subr.bf16.mxu0 %v745_v3  ;;  %v401_v13 = vld [vmem:[%s1083_s3] sm:$0xff]  ;;  %816 = vset.pattern.permute.xlu0 %v896_v15  ;;  %v404_v16 = vld [vmem:[%s1084_s4 + $0x8] sm:$0xff]  ;;  %vm552_vm3 = vcmask 130048   ;;  %s633_s18 = sshll.u32 %s901_s17, 4  ;;  %s634_s18 = int_to_ptr.vmem [resolvable:$true] %s633_s18 }
  0x2b   :  { %748 = vmatpush3.bf16.msra.mxu0 %v745_v3  ;;  %735 = vmatprep.mubr.msk.f32.mxu1 %vm64_vm0, %v401_v13  ;;  %v403_v14 = vld [vmem:[%s1084_s4] sm:$0xff]  ;;  %v175_v20 = vunpack.c.0.s8 %v174_v18  ;;  %v993_v31 = vsub.s32 0, %v177_v21  ;;  %s863_s19 = scalar_lea.vmem %s634_s18, 16  ;;  %s867_s20 = scalar_lea.vmem %s634_s18, 32 }
  0x2c   :  { %750 = vmatprep.subr.bf16.mxu0 %v749_v6  ;;  %407 = vperm.xlu1 %815, %v403_v14   ;;  %p864_p2 = scmp.ne.s32.totalorder %s634_s18, %s863_s19  ;;  %p868_p3 = scmp.lt.s32.totalorder %s634_s18, %s634_s18 }
  0x2d   :  { %v986_v22 = vsub.s32 %v175_v20, %v177_v21  ;;  %p869_p4 = scmp.lt.s32.totalorder %s867_s20, %s863_s19 }
  0x2f   :  { %752 = vmatpush3.bf16.msra.mxu0 %v749_v6  ;;  %p870_p5 = por %p869_p4, %p868_p3 }
  0x30   :  { %412 = vperm.xlu1 %815, %v404_v16  }
  0x31   :  { %p871_p6 = pnand %p870_p5, %p864_p2 }
  0x32   :  { %701 = vmatmul.mubr.msk.f32.vlgmr.msra.gmra.mrb[0].mxu0 %vm64_vm0, %v59_v7 }
 0x105   :  { %v702_v9 = vpop.f32.mrb[0].mxu0 }
 0x106   :  { %v154_v10 = vadd.f32 %v702_v9, %v645_v8  ;;  %v137_v11 = vpop.f32.mrb[1].mxu0 }
 0x107   :  { %v153_v12 = vadd.f32 %v645_v8, %v137_v11  ;;  %159 = vrot.lane.b32.xlu0 %v137_v11, %s895_s30 }
 0x108   :  { %156 = vst.msk [vmem:[#allocation2 + $0x8] sm:$0xff] %vm64_vm0, %v154_v10 }
 0x109   :  { %155 = vst.msk [vmem:[#allocation2] sm:$0xff] %vm64_vm0, %v153_v12 }
 0x10b   :  { %161 = vrot.lane.b32.xlu0 %v702_v9, %s895_s30 }
 0x10f   :  { %v169_v54 = vld [vmem:[#allocation2 + $0x8] sm:$0xff] }
 0x110   :  { %v168_v23 = vld [vmem:[#allocation2] sm:$0xff]  ;;  %v228_v0 = vrot.slane %v169_v54, %v986_v22  ;;  %v221_v19 = vcombine.high %v169_v54, %v169_v54 }
 0x111   :  { %v179_v24 = vrot.slane %v168_v23, %v986_v22  ;;  %v172_v25 = vcombine.high %v168_v23, %v168_v23 }
 0x112   :  { %v236_v6 = vcombine.high %v228_v0, %v228_v0  ;;  %v244_v11 = vrot.slane %v228_v0, %v986_v22 }
 0x113   :  { %v187_v26 = vcombine.high %v179_v24, %v179_v24  ;;  %v186_v27 = vrot.slane %v172_v25, %v986_v22  ;;  %v195_v28 = vrot.slane %v179_v24, %v986_v22 }
 0x114   :  { %v258_v12 = vrot.slane %v236_v6, %v986_v22  ;;  %v308_v17 = vrot.slane %v244_v11, %v993_v31  ;;  %v266_v25 = vcombine.high %v244_v11, %v244_v11 }
 0x115   :  { %v209_v29 = vrot.slane %v187_v26, %v986_v22  ;;  %v217_v32 = vcombine.high %v195_v28, %v195_v28  ;;  %v188_v34 = vcombine.high %v186_v27, %v186_v27  ;;  %v276_v36 = vrot.slane %v195_v28, %v993_v31 }
 0x116   :  { %v202_v37 = vrot.slane %v186_v27, %v986_v22  ;;  %v312_v18 = vrot.slane %v258_v12, %v993_v31  ;;  %v268_v26 = vcombine.high %v258_v12, %v258_v12  ;;  %v235_v27 = vrot.slane %v221_v19, %v986_v22 }
 0x117   :  { %v219_v33 = vcombine.high %v209_v29, %v209_v29  ;;  %v280_v38 = vrot.slane %v209_v29, %v993_v31  ;;  %v284_v39 = vrot.slane %v217_v32, %v993_v31  ;;  %v216_v41 = vrot.slane %v188_v34, %v986_v22 }
 0x118   :  { %v292_v47 = vrot.slane %v202_v37, %v993_v31  ;;  %v218_v62 = vcombine.high %v202_v37, %v202_v37  ;;  %v316_v32 = vrot.slane %v266_v25, %v993_v31  ;;  %v237_v34 = vcombine.high %v235_v27, %v235_v27 }
 0x119   :  { %v288_v40 = vrot.slane %v219_v33, %v993_v31  ;;  %v296_v51 = vrot.slane %v216_v41, %v993_v31  ;;  %v220_v63 = vcombine.high %v216_v41, %v216_v41  ;;  %v320_v33 = vrot.slane %v268_v26, %v993_v31 }
 0x11a   :  { %v300_v4 = vrot.slane %v218_v62, %v993_v31 }
 0x11b   :  { %v304_v5 = vrot.slane %v220_v63, %v993_v31 }
 0x179   :  { %v160_v30 = vpop.permute.xlu0 %159 }
 0x17a   :  { %165 = vst.msk [vmem:[#allocation3] sm:$0xff] %vm64_vm0, %v160_v30 }
 0x17d   :  { %v162_v35 = vpop.permute.xlu0 %161 }
 0x17e   :  { %166 = vst.msk [vmem:[#allocation3 + $0x8] sm:$0xff] %vm64_vm0, %v162_v35 }
 0x181   :  { %v271_v42 = vld [vmem:[#allocation3] sm:$0xff] }
 0x182   :  { %v353_v43 = vadd.f32 %v276_v36, %v271_v42  ;;  %v354_v44 = vadd.f32 %v280_v38, %v271_v42  ;;  %v355_v45 = vadd.f32 %v284_v39, %v271_v42  ;;  %v356_v46 = vadd.f32 %v288_v40, %v271_v42 }
 0x183   :  { %v357_v53 = vadd.f32 %v292_v47, %v271_v42  ;;  %v358_v58 = vadd.f32 %v296_v51, %v271_v42  ;;  %v359_v9 = vadd.f32 %v300_v4, %v271_v42  ;;  %v360_v10 = vadd.f32 %v304_v5, %v271_v42  ;;  %v408_v5 = vpop.permute.xlu1 %407 }
 0x184   :  { %v369_v48 = vmul.f32 0.01, %v353_v43  ;;  %v370_v49 = vmul.f32 0.01, %v354_v44  ;;  %v371_v50 = vmul.f32 0.01, %v355_v45  ;;  %v251_v39 = vrot.slane %v235_v27, %v986_v22 }
 0x185   :  { %v372_v52 = vmul.f32 0.01, %v356_v46  ;;  %v373_v2 = vmul.f32 0.01, %v357_v53  ;;  %v374_v3 = vmul.f32 0.01, %v358_v58  ;;  %v265_v40 = vrot.slane %v237_v34, %v986_v22 }
 0x186   :  { %v385_v55 = vmax.f32 %v353_v43, %v369_v48  ;;  %v386_v56 = vmax.f32 %v354_v44, %v370_v49  ;;  %v387_v57 = vmax.f32 %v355_v45, %v371_v50  ;;  %v375_v14 = vmul.f32 0.01, %v359_v9  ;;  %v272_v16 = vld [vmem:[#allocation3 + $0x8] sm:$0xff] }
 0x187   :  { %v388_v60 = vmax.f32 %v356_v46, %v372_v52  ;;  %v389_v7 = vmax.f32 %v357_v53, %v373_v2  ;;  %v390_v8 = vmax.f32 %v358_v58, %v374_v3  ;;  %v376_v15 = vmul.f32 0.01, %v360_v10  ;;  %v413_v6 = vpop.permute.xlu1 %412 }
 0x188   :  { %v753_v61 = vpack.c.bf16 %v386_v56, %v385_v55  ;;  %v391_v20 = vmax.f32 %v359_v9, %v375_v14  ;;  %v361_v23 = vadd.f32 %v308_v17, %v272_v16  ;;  %v362_v24 = vadd.f32 %v312_v18, %v272_v16 }
 0x189   :  { %v759_v1 = vpack.c.bf16 %v388_v60, %v387_v57  ;;  %v765_v13 = vpack.c.bf16 %v390_v8, %v389_v7  ;;  %v392_v21 = vmax.f32 %v360_v10, %v376_v15  ;;  %v363_v37 = vadd.f32 %v316_v32, %v272_v16  ;;  %v549_v15 = vld [vmem:[%s1085_s5] sm:$0x1] }
 0x18a   :  { %755 = vmatprep.subr.msk.bf16.mxu1 %vm1006_vm1, %v753_v61  ;;  %v377_v29 = vmul.f32 0.01, %v361_v23  ;;  %v378_v30 = vmul.f32 0.01, %v362_v24  ;;  %v364_v38 = vadd.f32 %v320_v33, %v272_v16  ;;  %v324_v44 = vrot.slane %v251_v39, %v993_v31 }
 0x18b   :  { %758 = vmatpush3.bf16.xpose.msk.msra.mxu1 %vm1006_vm1, %v753_v61  ;;  %v771_v28 = vpack.c.bf16 %v392_v21, %v391_v20  ;;  %v379_v42 = vmul.f32 0.01, %v363_v37  ;;  %v328_v45 = vrot.slane %v265_v40, %v993_v31  ;;  %v267_v50 = vcombine.high %v251_v39, %v251_v39 }
 0x18c   :  { %761 = vmatprep.subr.msk.bf16.mxu1 %vm1006_vm1, %v759_v1  ;;  %v393_v35 = vmax.f32 %v361_v23, %v377_v29  ;;  %v394_v36 = vmax.f32 %v362_v24, %v378_v30  ;;  %v380_v43 = vmul.f32 0.01, %v364_v38  ;;  %v365_v48 = vadd.f32 %v324_v44, %v272_v16 }
 0x18d   :  { %v395_v46 = vmax.f32 %v363_v37, %v379_v42  ;;  %v366_v49 = vadd.f32 %v328_v45, %v272_v16  ;;  %v269_v51 = vcombine.high %v265_v40, %v265_v40  ;;  %v332_v54 = vrot.slane %v267_v50, %v993_v31 }
 0x18e   :  { %v777_v41 = vpack.c.bf16 %v394_v36, %v393_v35  ;;  %v396_v47 = vmax.f32 %v364_v38, %v380_v43  ;;  %v381_v52 = vmul.f32 0.01, %v365_v48  ;;  %v898_v3 = vmov 0.0|0.0  }
 0x18f   :  { %v382_v53 = vmul.f32 0.01, %v366_v49  ;;  %v336_v55 = vrot.slane %v269_v51, %v993_v31  ;;  %v367_v58 = vadd.f32 %v332_v54, %v272_v16  ;;  %v402_v31 = vld [vmem:[%s1083_s3 + $0x8] sm:$0xff]  ;;  %801 = vmatprep.subr.bf16.mxu0 %v898_v3  ;;  %v900_v4 = vmov 0.0  }
 0x190   :  { %v783_v22 = vpack.c.bf16 %v396_v47, %v395_v46  ;;  %v397_v56 = vmax.f32 %v365_v48, %v381_v52  ;;  %742 = vmatprep.mubr.msk.f32.mxu0 %vm899_vm2, %v900_v4 }
 0x191   :  { %v398_v57 = vmax.f32 %v366_v49, %v382_v53  ;;  %v368_v60 = vadd.f32 %v336_v55, %v272_v16  ;;  %v383_v62 = vmul.f32 0.01, %v367_v58  ;;  %v551_v16 = vstv %s1086_s6 }
 0x193   :  { %764 = vmatpush3.bf16.xpose.msk.msra.mxu1 %vm1006_vm1, %v759_v1  ;;  %v789_v61 = vpack.c.bf16 %v398_v57, %v397_v56  ;;  %v384_v63 = vmul.f32 0.01, %v368_v60  ;;  %v399_v0 = vmax.f32 %v367_v58, %v383_v62 }
 0x194   :  { %767 = vmatprep.subr.msk.bf16.mxu1 %vm1006_vm1, %v765_v13 }
 0x195   :  { %v400_v1 = vmax.f32 %v368_v60, %v384_v63 }
 0x197   :  { %v795_v2 = vpack.c.bf16 %v400_v1, %v399_v0 }
 0x19b   :  { %770 = vmatpush3.bf16.xpose.msk.msra.mxu1 %vm1006_vm1, %v765_v13 }
 0x19c   :  { %773 = vmatprep.subr.msk.bf16.mxu1 %vm1006_vm1, %v771_v28 }
 0x1a3   :  { %776 = vmatpush3.bf16.xpose.msk.msra.mxu1 %vm1006_vm1, %v771_v28 }
 0x1a4   :  { %779 = vmatprep.subr.msk.bf16.mxu1 %vm1006_vm1, %v777_v41 }
 0x1ab   :  { %782 = vmatpush3.bf16.xpose.msk.msra.mxu1 %vm1006_vm1, %v777_v41 }
 0x1ac   :  { %785 = vmatprep.subr.msk.bf16.mxu1 %vm1006_vm1, %v783_v22 }
 0x1b3   :  { %788 = vmatpush3.bf16.xpose.msk.msra.mxu1 %vm1006_vm1, %v783_v22 }
 0x1b4   :  { %791 = vmatprep.subr.msk.bf16.mxu1 %vm1006_vm1, %v789_v61 }
 0x1bb   :  { %794 = vmatpush3.bf16.xpose.msk.msra.mxu1 %vm1006_vm1, %v789_v61 }
 0x1bc   :  { %797 = vmatprep.subr.msk.bf16.mxu1 %vm1006_vm1, %v795_v2 }
 0x1c3   :  { %800 = vmatpush3.bf16.xpose.msk.msra.mxu1 %vm1006_vm1, %v795_v2 }
 0x1ca   :  { %736 = vmatmul.mubr.msk.f32.vlgmr.msra.gmra.mrb[0].mxu1 %vm64_vm0, %v402_v31 }
 0x29d   :  { %v737_v7 = vpop.f32.mrb[0].mxu1 }
 0x29e   :  { %v542_v8 = vadd.f32 %v737_v7, %v413_v6  ;;  %v536_v9 = vpop.f32.mrb[1].mxu1 }
 0x29f   :  { %v537_v10 = vadd.f32 %v536_v9, %v408_v5 }
 0x2a0   :  { %v546_v11 = vmul.f32 0.01, %v542_v8 }
 0x2a1   :  { %v545_v59 = vmul.f32 0.01, %v537_v10 }
 0x2a2   :  { %v548_v12 = vmax.f32 %v542_v8, %v546_v11 }
 0x2a3   :  { %v547_v13 = vmax.f32 %v537_v10, %v545_v59 }
 0x2a5   :  { %v802_v14 = vpack.c.bf16 %v548_v12, %v547_v13 }
 0x2a7   :  { %803 = vmatpush3.bf16.msra.mxu0 %v802_v14 }
 0x2aa   :  { %743 = vmatmul.mubr.msk.f32.vlgmr.msra.gmra.mrb[2].mxu0 %vm552_vm3, %v549_v15 }
 0x37d   :  { %v622_v17 = vpop.f32.mrb[2].mxu0 }
 0x37e   :  { %v623_v18 = vadd.f32 %v622_v17, %v551_v16  ;;  %v744_v19 = vpop.f32.mrb[3].mxu0 }
 0x380   :  { %626 = vst [vmem:[#allocation10] sm:$0x1] %v623_v18 }
 0x381   :  { %874 = shalt.err (!%p871_p6)
}
 0x382   :  { %s875_s22 = scalar_lea.hbm %s1087_s7, 16 }
 0x383   :  { %p876_p7 = scmp.ne.s32.totalorder %s1087_s7, %s875_s22  ;;  %p879_p8 = scmp.lt.u32.totalorder %s875_s22, %s1087_s7 }
 0x385   :  { %p881_p9 = pnand %p879_p8, %p876_p7 }
 0x387   :  { %884 = shalt.err (!%p881_p9)
}
 0x388   :  { %636 = dma.vmem_to_hbm [thread:$0]  %s634_s18, 16, %s1087_s7, [#allocation7]  }
 0x389   :  { %889 = dma.done.wait [#allocation7], 16  }
 0x38a   :  { %890 = vsyncadd [#allocation7], 4294967280 }
 0x38b   :  { %640 = vsyncpa [#allocation6], 1 }
 0x38c   :  { %641 = vsyncpa [#allocation9], 1 }
 0x38d   :  { %642 = vsyncpa [#allocation7], 1 }

</bundles_post_ra>
